<compile_context>
chip_gen: v7x
topology: tpu7x:2x2x1
jax: 0.10.0
libtpu: 0.0.40
codegen_flags: <defaults>
</compile_context>

<pallas_src>
import functools

import jax
import jax.numpy as jnp
from jax.experimental import pallas as pl
from jax.experimental.pallas import tpu as pltpu


# Raised scoped-VMEM cap (defaults: 16 MiB v5e, 32 MiB v6e/v7x).  At ViT-Base
# with bf16 weights and block_m=512 the kernel needs ~32 MiB, so this is
# headroom, not a hard requirement, and stays within v7x's 64 MiB physical VMEM.
_VMEM_LIMIT_BYTES = 64 * 1024 * 1024


def _round_up(x, m):
    return ((x + m - 1) // m) * m


def _erf(x):
    # Abramowitz & Stegun 7.1.26 polynomial (|err| < 1.5e-7).  Built from
    # exp / mul / add / compare / select plus an EUP approx-reciprocal, so it
    # lowers cleanly through Mosaic and keeps the VALU slot free for the rest
    # of the GELU arithmetic.
    a1, a2, a3, a4, a5 = (0.254829592, -0.284496736, 1.421413741,
                          -1.453152027, 1.061405429)
    p = 0.3275911
    ax = jnp.abs(x)
    t = pl.reciprocal(1.0 + p * ax, approx=True)   # EUP slot, not a VALU divide
    poly = ((((a5 * t + a4) * t + a3) * t + a2) * t + a1) * t
    y = 1.0 - poly * jnp.exp(-ax * ax)
    return jnp.where(x >= 0, y, -y)


def _gelu_exact(x):
    return 0.5 * x * (1.0 + _erf(x * 0.7071067811865476))


def _mlp_kernel(x_ref, w1_ref, b1_ref, w2_ref, b2_ref, o_ref):
    # x: [tm, D_in] (f32), w1: [D_in, H_pad] (bf16), b1: [1, H_pad] (f32),
    # w2: [H_pad, O_pad] (bf16), b2: [1, O_pad] (f32), o: [tm, O_pad]
    x = x_ref[...].astype(jnp.bfloat16)                       # bf16 MXU operand
    h = jnp.dot(x, w1_ref[...],
                preferred_element_type=jnp.float32) + b1_ref[...]
    h = _gelu_exact(h)                                        # exact erf GELU, f32
    # Dropout with p == 0.0 (and eval mode) is the identity.
    o = jnp.dot(h.astype(jnp.bfloat16), w2_ref[...],
                preferred_element_type=jnp.float32) + b2_ref[...]
    o_ref[...] = o.astype(o_ref.dtype)                        # lane-dense store


def pack_mlp_params(w1, b1, w2, b2):
    """Pack PyTorch-layout Linear params into the kernel layout, once.

    w1: [H, D_in], b1: [H], w2: [D_out, H], b2: [D_out]   (torch layout)
    Returns pre-transposed, zero lane-padded arrays (weights bf16, biases f32)
    plus the true out_features.  Hoisted out of the hot path.
    """
    H, D_in = w1.shape
    D_out, H2 = w2.shape
    assert H2 == H
    H_pad = _round_up(H, 128)
    O_pad = _round_up(D_out, 128)
    w1_p = jnp.zeros((D_in, H_pad), jnp.bfloat16).at[:, :H].set(
        jnp.asarray(w1, jnp.float32).T.astype(jnp.bfloat16))
    b1_p = jnp.zeros((1, H_pad), jnp.float32).at[0, :H].set(
        jnp.asarray(b1, jnp.float32))
    w2_p = jnp.zeros((H_pad, O_pad), jnp.bfloat16).at[:H, :D_out].set(
        jnp.asarray(w2, jnp.float32).T.astype(jnp.bfloat16))
    b2_p = jnp.zeros((1, O_pad), jnp.float32).at[0, :D_out].set(
        jnp.asarray(b2, jnp.float32))
    return w1_p, b1_p, w2_p, b2_p, D_out


def _choose_block_m(m, max_block_m):
    """Row-tile size: <= max_block_m, multiple of 8, EVEN grid length for the
    2-TC v7x parallel split (no-op on single-TC v5e/v6e)."""
    nb = pl.cdiv(m, max_block_m)
    if nb > 1 and nb % 2 == 1:
        nb += 1
    return _round_up(pl.cdiv(m, nb), 8)


@functools.partial(jax.jit, static_argnames=("out_features", "max_block_m"))
def mlp_forward(x, w1_p, b1_p, w2_p, b2_p, *, out_features, max_block_m=512):
    """Fused Mlp forward.  x: [..., D_in] -> [..., out_features]."""
    orig_shape = x.shape
    d_in = orig_shape[-1]
    x2 = x.reshape(-1, d_in)
    m = x2.shape[0]
    h_pad = w1_p.shape[1]
    o_pad = w2_p.shape[1]

    if m <= max_block_m:
        # Whole problem in one kernel invocation; everything resident in VMEM
        # (no degenerate grid=(1,) double-buffer machinery).
        vmem = pl.BlockSpec(memory_space=pltpu.MemorySpace.VMEM)
        out_pad = pl.pallas_call(
            _mlp_kernel,
            out_shape=jax.ShapeDtypeStruct((m, o_pad), x.dtype),
            in_specs=[vmem, vmem, vmem, vmem, vmem],
            out_specs=vmem,
            compiler_params=pltpu.CompilerParams(
                vmem_limit_bytes=_VMEM_LIMIT_BYTES),
        )(x2, w1_p, b1_p, w2_p, b2_p)
    else:
        # Row-tiled grid: rows stream, weight slabs stay VMEM-resident
        # (constant index_map => fetched once, not re-DMA'd per step).
        # Ragged last block is handled by Pallas: no host-side pad/slice, the
        # out-of-range rows of the final tile are simply discarded.
        block_m = _choose_block_m(m, max_block_m)
        grid = (pl.cdiv(m, block_m),)
        out_pad = pl.pallas_call(
            _mlp_kernel,
            out_shape=jax.ShapeDtypeStruct((m, o_pad), x.dtype),
            grid=grid,
            in_specs=[
                pl.BlockSpec((block_m, d_in), lambda i: (i, 0)),
                pl.BlockSpec((d_in, h_pad), lambda i: (0, 0)),
                pl.BlockSpec((1, h_pad), lambda i: (0, 0)),
                pl.BlockSpec((h_pad, o_pad), lambda i: (0, 0)),
                pl.BlockSpec((1, o_pad), lambda i: (0, 0)),
            ],
            out_specs=pl.BlockSpec((block_m, o_pad), lambda i: (i, 0)),
            compiler_params=pltpu.CompilerParams(
                dimension_semantics=("parallel",),
                vmem_limit_bytes=_VMEM_LIMIT_BYTES),
        )(x2, w1_p, b1_p, w2_p, b2_p)

    # Column slice is free when out_features is already a 128 multiple
    # (e.g. ViT-Base 768); only odd widths pay a post-kernel copy.
    out = out_pad if o_pad == out_features else out_pad[:, :out_features]
    return out.reshape(*orig_shape[:-1], out_features)


def mlp_reference(x2, w1, b1, w2, b2):
    """Pure-JAX f32 reference mirroring torch: fc2(GELU_exact(fc1(x)))."""
    h = jnp.einsum("md,hd->mh", x2, w1,
                   precision=jax.lax.Precision.HIGHEST) + b1
    h = 0.5 * h * (1.0 + jax.scipy.special.erf(h * 0.7071067811865476))
    o = jnp.einsum("mh,oh->mo", h, w2,
                   precision=jax.lax.Precision.HIGHEST) + b2
    return o


if __name__ == "__main__":
    key = jax.random.PRNGKey(0)
    # SMALL ViT-like shapes: tokens [batch, seq, in_features], hidden = 2x.
    batch, seq, in_features, hidden_features = 2, 8, 32, 64
    out_features = in_features

    kx, k1, k2, kb1, kb2 = jax.random.split(key, 5)
    x = jax.random.normal(kx, (batch, seq, in_features), jnp.float32)

    # torch-layout params (trunc_normal std=0.02 weights, small random biases)
    w1 = 0.02 * jax.random.truncated_normal(
        k1, -2.0, 2.0, (hidden_features, in_features), jnp.float32)
    b1 = 0.01 * jax.random.normal(kb1, (hidden_features,), jnp.float32)
    w2 = 0.02 * jax.random.truncated_normal(
        k2, -2.0, 2.0, (out_features, hidden_features), jnp.float32)
    b2 = 0.01 * jax.random.normal(kb2, (out_features,), jnp.float32)

    # One-time packing (transpose + lane padding + bf16 cast, out of hot path).
    w1_p, b1_p, w2_p, b2_p, d_out = pack_mlp_params(w1, b1, w2, b2)

    # bf16 MXU operands => relaxed tolerance vs. the f32 reference
    # (deliberate precision trade; accumulation + bias + GELU remain f32).
    ATOL = RTOL = 5e-3

    # --- Small-M path: grid-less, whole arrays in VMEM -----------------------
    y = jax.block_until_ready(
        mlp_forward(x, w1_p, b1_p, w2_p, b2_p, out_features=d_out))
    assert y.shape == (batch, seq, out_features)
    ref = mlp_reference(x.reshape(-1, in_features), w1, b1, w2, b2
                        ).reshape(y.shape)
    assert jnp.allclose(y, ref, atol=ATOL, rtol=RTOL), (
        "max abs err = %g" % float(jnp.max(jnp.abs(y - ref))))

    # --- Large-M path: row-tiled ragged grid (no host pad/slice), even grid --
    x_big = jax.random.normal(jax.random.fold_in(key, 7),
                              (4, 130, in_features), jnp.float32)  # M=520
    y_big = jax.block_until_ready(
        mlp_forward(x_big, w1_p, b1_p, w2_p, b2_p, out_features=d_out))
    assert y_big.shape == (4, 130, out_features)
    ref_big = mlp_reference(x_big.reshape(-1, in_features), w1, b1, w2, b2
                            ).reshape(y_big.shape)
    assert jnp.allclose(y_big, ref_big, atol=ATOL, rtol=RTOL), (
        "max abs err = %g" % float(jnp.max(jnp.abs(y_big - ref_big))))

    print("KERNEL_OK")
</pallas_src>

<mosaic_0001>
module attributes {stable_mosaic.version = 11 : i64} {
  func.func @_mlp_kernel(%arg0: memref<16x32xf32, #tpu.memory_space<vmem>>, %arg1: memref<32x128xbf16, #tpu.memory_space<vmem>>, %arg2: memref<1x128xf32, #tpu.memory_space<vmem>>, %arg3: memref<128x128xbf16, #tpu.memory_space<vmem>>, %arg4: memref<1x128xf32, #tpu.memory_space<vmem>>, %arg5: memref<16x128xf32, #tpu.memory_space<vmem>>) attributes {dimension_semantics = [], scalar_prefetch = 0 : i64, scratch_operands = 0 : i64, tpu.core_type = #tpu.core_type<tc>} {
    %c0 = arith.constant 0 : index
    %c0_0 = arith.constant 0 : index
    %0 = vector.load %arg0[%c0, %c0_0] : memref<16x32xf32, #tpu.memory_space<vmem>>, vector<16x32xf32>
    %1 = arith.truncf %0 : vector<16x32xf32> to vector<16x32xbf16>
    %c0_1 = arith.constant 0 : index
    %c0_2 = arith.constant 0 : index
    %2 = vector.load %arg1[%c0_1, %c0_2] : memref<32x128xbf16, #tpu.memory_space<vmem>>, vector<32x128xbf16>
    %cst = arith.constant dense<0.000000e+00> : vector<16x128xf32>
    %3 = tpu.matmul %1, %2, %cst {dimension_numbers = #tpu.dot_dimension_numbers<[1], [0], [0], [1], [0, 0, 1, 1], [], []>} : vector<16x32xbf16>, vector<32x128xbf16>, vector<16x128xf32> -> vector<16x128xf32>
    %c0_3 = arith.constant 0 : index
    %c0_4 = arith.constant 0 : index
    %4 = vector.load %arg2[%c0_3, %c0_4] : memref<1x128xf32, #tpu.memory_space<vmem>>, vector<1x128xf32>
    %5 = vector.broadcast %4 : vector<1x128xf32> to vector<16x128xf32>
    %6 = arith.addf %3, %5 : vector<16x128xf32>
    %cst_5 = arith.constant 5.000000e-01 : f32
    %7 = vector.broadcast %cst_5 : f32 to vector<16x128xf32>
    %8 = arith.mulf %7, %6 : vector<16x128xf32>
    %cst_6 = arith.constant 0.707106769 : f32
    %9 = vector.broadcast %cst_6 : f32 to vector<16x128xf32>
    %10 = arith.mulf %6, %9 : vector<16x128xf32>
    %11 = math.absf %10 : vector<16x128xf32>
    %cst_7 = arith.constant 0.327591091 : f32
    %12 = vector.broadcast %cst_7 : f32 to vector<16x128xf32>
    %13 = arith.mulf %12, %11 : vector<16x128xf32>
    %cst_8 = arith.constant 1.000000e+00 : f32
    %14 = vector.broadcast %cst_8 : f32 to vector<16x128xf32>
    %15 = arith.addf %14, %13 : vector<16x128xf32>
    %16 = tpu.reciprocal %15 {approx = true} : vector<16x128xf32> -> vector<16x128xf32>
    %cst_9 = arith.constant 1.06140542 : f32
    %17 = vector.broadcast %cst_9 : f32 to vector<16x128xf32>
    %18 = arith.mulf %17, %16 : vector<16x128xf32>
    %cst_10 = arith.constant -1.45315206 : f32
    %19 = vector.broadcast %cst_10 : f32 to vector<16x128xf32>
    %20 = arith.addf %18, %19 : vector<16x128xf32>
    %21 = arith.mulf %20, %16 : vector<16x128xf32>
    %cst_11 = arith.constant 1.42141378 : f32
    %22 = vector.broadcast %cst_11 : f32 to vector<16x128xf32>
    %23 = arith.addf %21, %22 : vector<16x128xf32>
    %24 = arith.mulf %23, %16 : vector<16x128xf32>
    %cst_12 = arith.constant -0.284496725 : f32
    %25 = vector.broadcast %cst_12 : f32 to vector<16x128xf32>
    %26 = arith.addf %24, %25 : vector<16x128xf32>
    %27 = arith.mulf %26, %16 : vector<16x128xf32>
    %cst_13 = arith.constant 0.254829586 : f32
    %28 = vector.broadcast %cst_13 : f32 to vector<16x128xf32>
    %29 = arith.addf %27, %28 : vector<16x128xf32>
    %30 = arith.mulf %29, %16 : vector<16x128xf32>
    %cst_14 = arith.constant 0.000000e+00 : f32
    %31 = vector.broadcast %cst_14 : f32 to vector<16x128xf32>
    %32 = arith.subf %31, %11 : vector<16x128xf32>
    %33 = arith.mulf %32, %11 : vector<16x128xf32>
    %34 = math.exp %33 : vector<16x128xf32>
    %35 = arith.mulf %30, %34 : vector<16x128xf32>
    %cst_15 = arith.constant 1.000000e+00 : f32
    %36 = vector.broadcast %cst_15 : f32 to vector<16x128xf32>
    %37 = arith.subf %36, %35 : vector<16x128xf32>
    %cst_16 = arith.constant 0.000000e+00 : f32
    %38 = vector.broadcast %cst_16 : f32 to vector<16x128xf32>
    %39 = arith.cmpf oge, %10, %38 : vector<16x128xf32>
    %cst_17 = arith.constant 0.000000e+00 : f32
    %40 = vector.broadcast %cst_17 : f32 to vector<16x128xf32>
    %41 = arith.subf %40, %37 : vector<16x128xf32>
    %42 = arith.select %39, %37, %41 : vector<16x128xi1>, vector<16x128xf32>
    %cst_18 = arith.constant 1.000000e+00 : f32
    %43 = vector.broadcast %cst_18 : f32 to vector<16x128xf32>
    %44 = arith.addf %43, %42 : vector<16x128xf32>
    %45 = arith.mulf %8, %44 : vector<16x128xf32>
    %46 = arith.truncf %45 : vector<16x128xf32> to vector<16x128xbf16>
    %c0_19 = arith.constant 0 : index
    %c0_20 = arith.constant 0 : index
    %47 = vector.load %arg3[%c0_19, %c0_20] : memref<128x128xbf16, #tpu.memory_space<vmem>>, vector<128x128xbf16>
    %cst_21 = arith.constant dense<0.000000e+00> : vector<16x128xf32>
    %48 = tpu.matmul %46, %47, %cst_21 {dimension_numbers = #tpu.dot_dimension_numbers<[1], [0], [0], [1], [0, 0, 1, 1], [], []>} : vector<16x128xbf16>, vector<128x128xbf16>, vector<16x128xf32> -> vector<16x128xf32>
    %c0_22 = arith.constant 0 : index
    %c0_23 = arith.constant 0 : index
    %49 = vector.load %arg4[%c0_22, %c0_23] : memref<1x128xf32, #tpu.memory_space<vmem>>, vector<1x128xf32>
    %50 = vector.broadcast %49 : vector<1x128xf32> to vector<16x128xf32>
    %51 = arith.addf %48, %50 : vector<16x128xf32>
    %c0_24 = arith.constant 0 : index
    %c0_25 = arith.constant 0 : index
    %52 = vector.load %arg5[%c0_24, %c0_25] : memref<16x128xf32, #tpu.memory_space<vmem>>, vector<16x128xf32>
    tpu.vector_store %arg5[%c0_24, %c0_25], %51 {strides = array<i32>} : memref<16x128xf32, #tpu.memory_space<vmem>>, vector<16x128xf32>,
    return
  }
}

</mosaic_0001>

<bundles_post_ra>
// kernel: mlp_forward.1
= control target key start
LH: loop header
LB: loop body
LE: loop exit
PB: predicated region body
PF: predicated region fallthrough
CT: control target
= control target key end

     0   :  { %10 = vsyncpa [#allocation3], 0  ;;  %s686_s0 = inlined_call_operand.hbm [shape: f32[16,32], index: 0, kind: input, shape index: {}]   ;;  %s687_s1 = inlined_call_operand.hbm [shape: bf16[32,128], index: 1, kind: input, shape index: {}]   ;;  %s688_s2 = inlined_call_operand.hbm [shape: f32[1,128], index: 2, kind: input, shape index: {}]   ;;  %s689_s3 = inlined_call_operand.hbm [shape: bf16[128,128], index: 3, kind: input, shape index: {}]   ;;  %s690_s4 = inlined_call_operand.hbm [shape: f32[1,128], index: 4, kind: input, shape index: {}]   ;;  %s691_s5 = inlined_call_operand.hbm [shape: f32[16,128], index: 5, kind: output, shape index: {}]  }
   0x1   :  { %11 = vsyncpa [#allocation6], 0 }
   0x2   :  { %12 = vsyncpa [#allocation9], 0 }
   0x3   :  { %13 = vsyncpa [#allocation4], 0  ;;  %s566_s18 = smov [#allocation5]   ;;  %s426_s22 = scalar_lea.hbm %s687_s1, 256 }
   0x4   :  { %s31_s19 = sshll.u32 %s566_s18, 4  ;;  %p427_p0 = scmp.ne.s32.totalorder %s687_s1, %s426_s22  ;;  %s32_s19 = int_to_ptr.vmem [resolvable:$true] %s31_s19 }
   0x5   :  { %p430_p1 = scmp.lt.u32.totalorder %s426_s22, %s687_s1 }
   0x7   :  { %p432_p2 = pnand %p430_p1, %p427_p0 }
   0x9   :  { %435 = shalt.err (!%p432_p2)
}
   0xa   :  { %s436_s27 = scalar_lea.vmem %s32_s19, 256  ;;  %p441_p4 = scmp.lt.s32.totalorder %s32_s19, %s32_s19 }
   0xb   :  { %p437_p3 = scmp.ne.s32.totalorder %s32_s19, %s436_s27  ;;  %p442_p5 = scmp.lt.s32.totalorder %s436_s27, %s436_s27 }
   0xd   :  { %p443_p6 = por %p442_p5, %p441_p4 }
   0xf   :  { %p444_p7 = pnand %p443_p6, %p437_p3 }
  0x11   :  { %447 = shalt.err (!%p444_p7)
}
  0x12   :  { %s567_s28 = smov 64   ;;  %s568_s29 = smov 4  }
  0x13   :  { %37 = dma.hbm_to_vmem [thread:$0]  %s687_s1, 256, %s32_s19, [#allocation6], %s567_s28, %s567_s28, %s568_s29  }
  0x14   :  { %s569_s7 = smov [#allocation8]   ;;  %s570_s9 = smov [#allocation2]  }
  0x15   :  { %s53_s8 = sshll.u32 %s569_s7, 4  ;;  %s19_s10 = sshll.u32 %s570_s9, 4  ;;  %s54_s8 = int_to_ptr.vmem [resolvable:$true] %s53_s8  ;;  %s20_s10 = int_to_ptr.vmem [resolvable:$true] %s19_s10 }
  0x16   :  { %s448_s13 = scalar_lea.hbm %s689_s3, 1024 }
  0x17   :  { %p449_p8 = scmp.ne.s32.totalorder %s689_s3, %s448_s13  ;;  %p452_p9 = scmp.lt.u32.totalorder %s448_s13, %s689_s3 }
  0x19   :  { %p454_p10 = pnand %p452_p9, %p449_p8 }
  0x1b   :  { %457 = shalt.err (!%p454_p10)
}
  0x1c   :  { %s458_s1 = scalar_lea.vmem %s54_s8, 1024  ;;  %p463_p12 = scmp.lt.s32.totalorder %s54_s8, %s54_s8 }
  0x1d   :  { %p459_p11 = scmp.ne.s32.totalorder %s54_s8, %s458_s1  ;;  %p464_p13 = scmp.lt.s32.totalorder %s458_s1, %s458_s1 }
  0x1f   :  { %p465_p0 = por %p464_p13, %p463_p12 }
  0x21   :  { %p466_p1 = pnand %p465_p0, %p459_p11 }
  0x23   :  { %469 = shalt.err (!%p466_p1)
}
  0x24   :  { %59 = dma.hbm_to_vmem [thread:$0]  %s689_s3, 1024, %s54_s8, [#allocation9], %s567_s28, %s567_s28, %s568_s29  }
  0x25   :  { %s470_s22 = scalar_lea.hbm %s686_s0, 256 }
  0x26   :  { %p471_p2 = scmp.ne.s32.totalorder %s686_s0, %s470_s22  ;;  %p474_p3 = scmp.lt.u32.totalorder %s470_s22, %s686_s0 }
  0x28   :  { %p476_p4 = pnand %p474_p3, %p471_p2 }
  0x2a   :  { %479 = shalt.err (!%p476_p4)
}
  0x2b   :  { %s480_s27 = scalar_lea.vmem %s20_s10, 256  ;;  %p485_p6 = scmp.lt.s32.totalorder %s20_s10, %s20_s10 }
  0x2c   :  { %p481_p5 = scmp.ne.s32.totalorder %s20_s10, %s480_s27  ;;  %p486_p7 = scmp.lt.s32.totalorder %s480_s27, %s480_s27 }
  0x2e   :  { %p487_p8 = por %p486_p7, %p485_p6 }
  0x30   :  { %p488_p9 = pnand %p487_p8, %p481_p5 }
  0x32   :  { %491 = shalt.err (!%p488_p9)
}
  0x33   :  { %s571_s3 = smov 128   ;;  %s572_s28 = smov 8  }
  0x34   :  { %25 = dma.hbm_to_vmem [thread:$0]  %s686_s0, 256, %s20_s10, [#allocation3], %s571_s3, %s571_s3, %s572_s28  }
  0x35   :  { %s573_s6 = smov [#allocation7]   ;;  %s574_s8 = smov [#allocation10]  }
  0x36   :  { %s44_s7 = sshll.u32 %s573_s6, 4  ;;  %s66_s9 = sshll.u32 %s574_s8, 4  ;;  %s45_s7 = int_to_ptr.vmem [resolvable:$true] %s44_s7  ;;  %s67_s9 = int_to_ptr.vmem [resolvable:$true] %s66_s9 }
  0x37   :  { %s492_s13 = scalar_lea.hbm %s688_s2, 16 }
  0x38   :  { %p493_p10 = scmp.ne.s32.totalorder %s688_s2, %s492_s13  ;;  %p496_p11 = scmp.lt.u32.totalorder %s492_s13, %s688_s2 }
  0x3a   :  { %p498_p12 = pnand %p496_p11, %p493_p10 }
  0x3c   :  { %501 = shalt.err (!%p498_p12)
}
  0x3d   :  { %s502_s0 = scalar_lea.vmem %s45_s7, 16  ;;  %s506_s10 = scalar_lea.vmem %s45_s7, 32 }
  0x3e   :  { %p503_p13 = scmp.ne.s32.totalorder %s45_s7, %s502_s0  ;;  %p507_p0 = scmp.lt.s32.totalorder %s45_s7, %s45_s7 }
  0x3f   :  { %p508_p1 = scmp.lt.s32.totalorder %s506_s10, %s502_s0 }
  0x41   :  { %p509_p2 = por %p508_p1, %p507_p0 }
  0x43   :  { %p510_p3 = pnand %p509_p2, %p503_p13 }
  0x45   :  { %513 = shalt.err (!%p510_p3)
}
  0x46   :  { %47 = dma.hbm_to_vmem [thread:$0]  %s688_s2, 16, %s45_s7, [#allocation6]  }
  0x47   :  { %s514_s21 = scalar_lea.hbm %s690_s4, 16 }
  0x48   :  { %p515_p4 = scmp.ne.s32.totalorder %s690_s4, %s514_s21  ;;  %p518_p5 = scmp.lt.u32.totalorder %s514_s21, %s690_s4 }
  0x4a   :  { %p520_p6 = pnand %p518_p5, %p515_p4 }
  0x4c   :  { %523 = shalt.err (!%p520_p6)
}
  0x4d   :  { %s524_s26 = scalar_lea.vmem %s67_s9, 16  ;;  %s528_s27 = scalar_lea.vmem %s67_s9, 32 }
  0x4e   :  { %p525_p7 = scmp.ne.s32.totalorder %s67_s9, %s524_s26  ;;  %p529_p8 = scmp.lt.s32.totalorder %s67_s9, %s67_s9 }
  0x4f   :  { %p530_p9 = scmp.lt.s32.totalorder %s528_s27, %s524_s26 }
  0x51   :  { %p531_p10 = por %p530_p9, %p529_p8 }
  0x53   :  { %p532_p11 = pnand %p531_p10, %p525_p7 }
  0x55   :  { %535 = shalt.err (!%p532_p11)
}
  0x56   :  { %69 = dma.hbm_to_vmem [thread:$0]  %s690_s4, 16, %s67_s9, [#allocation9]  }
  0x57   :  { %558 = dma.done.wait [#allocation3], 256  }
  0x58   :  { %559 = vsyncadd [#allocation3], 4294967040 }
  0x59   :  { %560 = dma.done.wait [#allocation6], 272  }
  0x5a   :  { %561 = vsyncadd [#allocation6], 4294967024 }
  0x5b   :  { %562 = dma.done.wait [#allocation9], 1040  }
  0x5c   :  { %563 = vsyncadd [#allocation9], 4294966256  ;;  %v575_v0 = vmov 0.0   ;;  %vm576_vm0 = vmmov 0   ;;  %v408_v1 = vld [vmem:[#allocation5] sm:$0xff]   ;;  %v409_v2 = vld [vmem:[#allocation5 + $0x8] sm:$0xff]  }
  0x5d   :  { %368 = vmatprep.subr.bf16.mxu0 %v575_v0  ;;  %372 = vmatprep.mubr.msk.bf16.mxu0 %vm576_vm0, %v575_v0  ;;  %v86_v3 = vld [vmem:[#allocation2] sm:$0xff]  ;;  %v87_v4 = vld [vmem:[#allocation2 + $0x8] sm:$0xff]  ;;  %vm112_vm1 = vcmask 261120   ;;  %v412_v8 = vld [vmem:[#allocation8 + $0x10] sm:$0xff]   ;;  %s577_s4 = smov [#allocation11]  }
  0x5e   :  { %376 = vmatprep.subr.bf16.mxu1 %v575_v0  ;;  %392 = vmatprep.mubr.msk.bf16.mxu1 %vm576_vm0, %v575_v0  ;;  %v88_v5 = vpack.c.bf16 %v87_v4, %v86_v3  ;;  %v410_v6 = vld [vmem:[#allocation8] sm:$0xff]   ;;  %v411_v7 = vld [vmem:[#allocation8 + $0x8] sm:$0xff]   ;;  %v413_v9 = vld [vmem:[#allocation8 + $0x18] sm:$0xff]   ;;  %s329_s30 = sshll.u32 %s577_s4, 4  ;;  %s330_s30 = int_to_ptr.vmem [resolvable:$true] %s329_s30 }
  0x5f   :  { %369 = vmatpush3.bf16.msra.mxu0 %v408_v1  ;;  %377 = vmatpush3.bf16.msra.mxu1 %v410_v6  ;;  %v414_v10 = vld [vmem:[#allocation8 + $0x20] sm:$0xff]   ;;  %v415_v11 = vld [vmem:[#allocation8 + $0x28] sm:$0xff]   ;;  %v416_v12 = vld [vmem:[#allocation8 + $0x30] sm:$0xff]   ;;  %s536_s6 = scalar_lea.vmem %s330_s30, 256  ;;  %p541_p13 = scmp.lt.s32.totalorder %s330_s30, %s330_s30 }
  0x60   :  { %370 = vmatprep.subr.bf16.mxu0 %v575_v0  ;;  %378 = vmatprep.subr.bf16.mxu1 %v575_v0  ;;  %v417_v13 = vld [vmem:[#allocation8 + $0x38] sm:$0xff]   ;;  %p537_p12 = scmp.ne.s32.totalorder %s330_s30, %s536_s6  ;;  %p542_p0 = scmp.lt.s32.totalorder %s536_s6, %s536_s6 }
  0x61   :  { %v343_v14 = vld [vmem:[#allocation7] ss:$0 sm:$0xff] }
  0x62   :  { %p543_p1 = por %p542_p0, %p541_p13 }
  0x63   :  { %371 = vmatpush3.bf16.msra.mxu0 %v409_v2  ;;  %379 = vmatpush3.bf16.msra.mxu1 %v411_v7 }
  0x64   :  { %380 = vmatprep.subr.bf16.mxu1 %v575_v0  ;;  %p544_p2 = pnand %p543_p1, %p537_p12 }
  0x66   :  { %373 = vmatmul.mubr.msk.bf16.vlgmr.msra.gmra.mrb[0].mxu0 %vm112_vm1, %v88_v5 }
  0x67   :  { %381 = vmatpush3.bf16.msra.mxu1 %v412_v8  ;;  %v347_v8 = vld [vmem:[#allocation10] ss:$0 sm:$0xff] }
  0x68   :  { %382 = vmatprep.subr.bf16.mxu1 %v575_v0 }
  0x6b   :  { %383 = vmatpush3.bf16.msra.mxu1 %v413_v9 }
  0x6c   :  { %384 = vmatprep.subr.bf16.mxu1 %v575_v0 }
  0x6f   :  { %385 = vmatpush3.bf16.msra.mxu1 %v414_v10 }
  0x70   :  { %386 = vmatprep.subr.bf16.mxu1 %v575_v0 }
  0x73   :  { %387 = vmatpush3.bf16.msra.mxu1 %v415_v11 }
  0x74   :  { %388 = vmatprep.subr.bf16.mxu1 %v575_v0 }
  0x77   :  { %389 = vmatpush3.bf16.msra.mxu1 %v416_v12 }
  0x78   :  { %390 = vmatprep.subr.bf16.mxu1 %v575_v0 }
  0x7b   :  { %391 = vmatpush3.bf16.msra.mxu1 %v417_v13 }
 0x139   :  { %v150_v15 = vpop.f32.mrb[0].mxu0 }
 0x13a   :  { %v151_v16 = vadd.f32 %v343_v14, %v150_v15  ;;  %v374_v17 = vpop.f32.mrb[1].mxu0 }
 0x13b   :  { %v153_v18 = vpop.f32.mrb[2].mxu0 }
 0x13c   :  { %v159_v19 = vmul.f32 0.70710677, %v151_v16  ;;  %v154_v20 = vadd.f32 %v343_v14, %v153_v18  ;;  %v375_v21 = vpop.f32.mrb[3].mxu0  ;;  %v157_v2 = vmul.f32 0.5, %v151_v16 }
 0x13e   :  { %v161_v22 = vand.u32 2147483647, %v159_v19  ;;  %v160_v23 = vmul.f32 0.70710677, %v154_v20  ;;  %vm199_vm2 = vcmp.ge.f32.partialorder %v159_v19, 0.0  ;;  %v158_v3 = vmul.f32 0.5, %v154_v20 }
 0x140   :  { %v163_v24 = vmul.f32 0.3275911, %v161_v22  ;;  %v162_v25 = vand.u32 2147483647, %v160_v23  ;;  %v187_v29 = vsub.f32 0.0, %v161_v22  ;;  %vm200_vm3 = vcmp.ge.f32.partialorder %v160_v23, 0.0 }
 0x142   :  { %v165_v26 = vadd.f32 1.0, %v163_v24  ;;  %v164_v27 = vmul.f32 0.3275911, %v162_v25  ;;  %v188_v30 = vsub.f32 0.0, %v162_v25  ;;  %v189_v32 = vmul.f32 %v187_v29, %v161_v22 }
 0x144   :  { %418 = vrcp.f32 %v165_v26  ;;  %v166_v28 = vadd.f32 1.0, %v164_v27  ;;  %v190_v36 = vmul.f32 %v188_v30, %v162_v25  ;;  %v191_v37 = vmul.f32 1.442695, %v189_v32 }
 0x146   :  { %420 = vrcp.f32 %v166_v28  ;;  %v193_v42 = vmul.f32 1.442695, %v190_v36 }
 0x147   :  { %422 = vpow2.f32 %v191_v37 }
 0x148   :  { %424 = vpow2.f32 %v193_v42 }
 0x14e   :  { %v419_v31 = vpop.eup %418 }
 0x14f   :  { %v169_v33 = vmul.f32 1.0614054, %v419_v31 }
 0x150   :  { %v421_v34 = vpop.eup %420 }
 0x151   :  { %v171_v35 = vadd.f32 -1.4531521, %v169_v33  ;;  %v170_v38 = vmul.f32 1.0614054, %v421_v34  ;;  %v423_v53 = vpop.eup %422 }
 0x152   :  { %v425_v57 = vpop.eup %424 }
 0x153   :  { %v173_v39 = vmul.f32 %v419_v31, %v171_v35  ;;  %v172_v40 = vadd.f32 -1.4531521, %v170_v38 }
 0x155   :  { %v175_v41 = vadd.f32 1.4214138, %v173_v39  ;;  %v174_v43 = vmul.f32 %v421_v34, %v172_v40 }
 0x157   :  { %v177_v44 = vmul.f32 %v419_v31, %v175_v41  ;;  %v176_v45 = vadd.f32 1.4214138, %v174_v43 }
 0x159   :  { %v179_v46 = vadd.f32 -0.28449672, %v177_v44  ;;  %v178_v47 = vmul.f32 %v421_v34, %v176_v45 }
 0x15b   :  { %v181_v48 = vmul.f32 %v419_v31, %v179_v46  ;;  %v180_v49 = vadd.f32 -0.28449672, %v178_v47 }
 0x15d   :  { %v183_v50 = vadd.f32 0.2548296, %v181_v48  ;;  %v182_v51 = vmul.f32 %v421_v34, %v180_v49 }
 0x15f   :  { %v185_v52 = vmul.f32 %v419_v31, %v183_v50  ;;  %v184_v54 = vadd.f32 0.2548296, %v182_v51 }
 0x161   :  { %v195_v55 = vmul.f32 %v423_v53, %v185_v52  ;;  %v186_v56 = vmul.f32 %v421_v34, %v184_v54 }
 0x163   :  { %v197_v58 = vsub.f32 1.0, %v195_v55  ;;  %v196_v59 = vmul.f32 %v425_v57, %v186_v56 }
 0x165   :  { %v201_v60 = vsub.f32 0.0, %v197_v58  ;;  %v198_v61 = vsub.f32 1.0, %v196_v59 }
 0x167   :  { %v203_v62 = vsel %vm199_vm2, %v197_v58, %v201_v60  ;;  %v202_v63 = vsub.f32 0.0, %v198_v61 }
 0x168   :  { %v205_v0 = vadd.f32 1.0, %v203_v62 }
 0x169   :  { %v204_v1 = vsel %vm200_vm3, %v198_v61, %v202_v63 }
 0x16a   :  { %v206_v4 = vadd.f32 1.0, %v204_v1  ;;  %v207_v5 = vmul.f32 %v205_v0, %v157_v2 }
 0x16c   :  { %v208_v6 = vmul.f32 %v206_v4, %v158_v3 }
 0x16e   :  { %v209_v7 = vpack.c.bf16 %v208_v6, %v207_v5 }
 0x170   :  { %393 = vmatmul.mubr.bf16.vlgmr.msra.gmra.mrb[0].mxu1 %v209_v7 }
 0x243   :  { %v315_v9 = vpop.f32.mrb[0].mxu1 }
 0x244   :  { %v316_v10 = vadd.f32 %v347_v8, %v315_v9  ;;  %v394_v11 = vpop.f32.mrb[1].mxu1 }
 0x245   :  { %v318_v12 = vpop.f32.mrb[2].mxu1 }
 0x246   :  { %322 = vst [vmem:[#allocation11] sm:$0xff] %v316_v10  ;;  %v319_v13 = vadd.f32 %v347_v8, %v318_v12  ;;  %v395_v14 = vpop.f32.mrb[3].mxu1 }
 0x248   :  { %323 = vst [vmem:[#allocation11 + $0x8] sm:$0xff] %v319_v13 }
 0x249   :  { %547 = shalt.err (!%p544_p2)
}
 0x24a   :  { %s548_s9 = scalar_lea.hbm %s691_s5, 256 }
 0x24b   :  { %p549_p3 = scmp.ne.s32.totalorder %s691_s5, %s548_s9  ;;  %p552_p4 = scmp.lt.u32.totalorder %s548_s9, %s691_s5 }
 0x24d   :  { %p554_p5 = pnand %p552_p4, %p549_p3 }
 0x24f   :  { %557 = shalt.err (!%p554_p5)
}
 0x250   :  { %335 = dma.vmem_to_hbm [thread:$0]  %s330_s30, 256, %s691_s5, [#allocation4], %s571_s3, %s571_s3, %s572_s28  }
 0x251   :  { %564 = dma.done.wait [#allocation4], 256  }
 0x252   :  { %565 = vsyncadd [#allocation4], 4294967040 }
 0x253   :  { %339 = vsyncpa [#allocation3], 1 }
 0x254   :  { %340 = vsyncpa [#allocation6], 1 }
 0x255   :  { %341 = vsyncpa [#allocation9], 1 }
 0x256   :  { %342 = vsyncpa [#allocation4], 1 }

</bundles_post_ra>
